<compile_context>
chip_gen: v7x
topology: tpu7x:2x2x1
jax: 0.10.0
libtpu: 0.0.40
codegen_flags: <defaults>
</compile_context>

<pallas_src>
import functools

import jax
import jax.numpy as jnp
from jax.experimental import pallas as pl
from jax.experimental.pallas import tpu as pltpu


def _attention_head_kernel(x_ref, w_ref, o_ref, *, scale, head_size, block_b,
                           seq_len, compute_dtype):
    """One grid step: causal attention for `block_b` batch elements.

    x_ref: (block_b * T, C)  batch-folded activations (input dtype, cast here)
    w_ref: (C, 3H)           fused [Wq | Wk | Wv], already bf16
    o_ref: (block_b, T, H)   output block
    """
    H, T, Bb = head_size, seq_len, block_b

    # Fused QKV projection: one (Bb*T, C) @ (C, 3H) MXU matmul, bf16 in / f32 acc.
    x2d = x_ref[...].astype(compute_dtype)
    qkv = jnp.dot(x2d, w_ref[...], preferred_element_type=jnp.float32)   # (Bb*T, 3H)
    # Split the sublane dim back into (batch, seq); lane dim untouched -> no relayout.
    qkv = qkv.reshape(Bb, T, 3 * H)

    # Scale q (T*H values) instead of the (T*T) score matrix. Scale uses C = n_embed,
    # exactly as the reference PyTorch module does.
    q = (qkv[:, :, 0:H] * scale).astype(compute_dtype)                   # (Bb, T, H)
    k = qkv[:, :, H:2 * H].astype(compute_dtype)                         # (Bb, T, H)
    v = qkv[:, :, 2 * H:3 * H].astype(compute_dtype)                     # (Bb, T, H)

    # scores = q @ k^T, contracting H on both operands (no transposed copy of k).
    s = jnp.einsum("bqd,bkd->bqk", q, k,
                   preferred_element_type=jnp.float32)                   # (Bb, T, T)

    # Causal mask from a single 2D (T, T) iota pair, broadcast over the batch dim.
    row = jax.lax.broadcasted_iota(jnp.int32, (T, T), 0)
    col = jax.lax.broadcasted_iota(jnp.int32, (T, T), 1)
    s = jnp.where((col <= row)[None, :, :], s, -jnp.inf)

    # Numerically stable softmax in f32; denominator reciprocal on the EUP (approx).
    m = jnp.max(s, axis=-1, keepdims=True)
    p = jnp.exp(s - m)
    p = p * pl.reciprocal(jnp.sum(p, axis=-1, keepdims=True), approx=True)

    # TODO(synk): train-mode dropout on p would need pltpu.prng_seed +
    # pltpu.stateful_bernoulli; the reference module uses p=0.0 / eval -> identity.

    o = jnp.einsum("bqk,bkd->bqd", p.astype(compute_dtype), v,
                   preferred_element_type=jnp.float32)                   # (Bb, T, H)
    o_ref[...] = o.astype(o_ref.dtype)


def fuse_qkv_weights(wq, wk, wv, compute_dtype=jnp.bfloat16):
    """Init-time fusion: concatenate Wq/Wk/Wv into (C, 3H) and pre-cast to bf16.

    Call this ONCE when parameters are created — not on every forward call."""
    return jnp.concatenate([wq, wk, wv], axis=1).astype(compute_dtype)


def _pick_block_b(B, T, C, H, *, target_rows=256, vmem_block_budget=20 << 20):
    """Largest divisor of B such that:
       * block_b * T ~ target MXU M tile (256 rows on v6e/v7x; two passes on v5e),
       * the grid keeps >= 2 steps so v7x's two TensorCores both get work,
       * double-buffered x/out blocks fit a conservative VMEM budget (v7x: 64 MiB)."""
    cap = max(1, target_rows // max(T, 1))
    if B >= 2:
        cap = min(cap, B // 2)
    best = 1
    for bb in range(1, min(cap, B) + 1):
        if B % bb:
            continue
        blk_bytes = 2 * (bb * T * C * 4) + 2 * (bb * T * H * 4)  # double-buffered x+out
        if blk_bytes > vmem_block_budget:
            break
        best = bb
    return best


def single_attention_head(x, w_qkv, *, block_b=None, compute_dtype=jnp.bfloat16):
    """x: (B, T, C) f32; w_qkv: (C, 3H) pre-fused bf16 weight -> (B, T, H) f32."""
    B, T, C = x.shape
    H = w_qkv.shape[1] // 3
    scale = float(C) ** -0.5

    if block_b is None:
        block_b = _pick_block_b(B, T, C, H)
    assert B % block_b == 0
    num_blocks = B // block_b

    # Fold batch into rows in HBM layout (contiguous reshape, effectively free) so the
    # kernel loads a plain 2D tile — no in-kernel relayout of the lane-padded x block.
    x2d = x.reshape(B * T, C)

    # VMEM footprint estimate (double-buffered x/out blocks + double-buffered weight),
    # used to set an explicit scoped-VMEM limit (matters once T/C are realistic,
    # especially on v7x with 64 MiB physical / 32 MiB default scoped).
    est_vmem = (2 * (block_b * T * C * x.dtype.itemsize)
                + 2 * (block_b * T * H * x.dtype.itemsize)
                + 2 * (C * 3 * H * jnp.dtype(compute_dtype).itemsize))
    vmem_limit = int(min(48 << 20, max(16 << 20, 2 * est_vmem + (2 << 20))))

    kernel = functools.partial(_attention_head_kernel, scale=scale, head_size=H,
                               block_b=block_b, seq_len=T, compute_dtype=compute_dtype)

    return pl.pallas_call(
        kernel,
        out_shape=jax.ShapeDtypeStruct((B, T, H), x.dtype),
        grid_spec=pl.GridSpec(
            grid=(num_blocks,),
            in_specs=[
                pl.BlockSpec((block_b * T, C), lambda i: (i, 0)),  # batch-folded x rows
                pl.BlockSpec((C, 3 * H), lambda i: (0, 0)),        # resident fused weight
            ],
            out_specs=pl.BlockSpec((block_b, T, H), lambda i: (i, 0, 0)),
        ),
        compiler_params=pltpu.CompilerParams(
            dimension_semantics=("parallel",),
            vmem_limit_bytes=vmem_limit,
        ),
    )(x2d, w_qkv)


if __name__ == "__main__":
    # config: n_embed=32, context_length=8, head_size=16, dropout=0.0 (eval)
    B, T, C, H = 2, 8, 32, 16

    key = jax.random.PRNGKey(0)
    kx, kq, kk, kv = jax.random.split(key, 4)
    x = jax.random.normal(kx, (B, T, C), dtype=jnp.float32)
    # deterministic "Linear(n_embed, head_size, bias=False)" weights, stored as (C, H)
    wq = jax.random.normal(kq, (C, H), dtype=jnp.float32) * (C ** -0.5)
    wk = jax.random.normal(kk, (C, H), dtype=jnp.float32) * (C ** -0.5)
    wv = jax.random.normal(kv, (C, H), dtype=jnp.float32) * (C ** -0.5)

    # Init-time (one-off) weight fusion + bf16 pre-cast — hoisted out of the call path.
    w_qkv = fuse_qkv_weights(wq, wk, wv)

    out = jax.block_until_ready(single_attention_head(x, w_qkv))

    # sanity check against a pure-JAX f32 reference
    def ref(x, wq, wk, wv):
        q = x @ wq
        k = x @ wk
        v = x @ wv
        s = (q @ jnp.swapaxes(k, -2, -1)) * (C ** -0.5)
        mask = jnp.tril(jnp.ones((T, T), dtype=bool))
        s = jnp.where(mask, s, -jnp.inf)
        p = jax.nn.softmax(s, axis=-1)
        return p @ v

    expected = ref(x, wq, wk, wv)
    assert out.shape == (B, T, H)
    # bf16 MXU operands (f32 accumulation) + approx reciprocal -> loose tolerance
    # against the pure-f32 reference; real bugs (mask/scale/layout) are O(1) errors.
    err = float(jnp.max(jnp.abs(out - expected)))
    assert jnp.allclose(out, expected, atol=5e-2, rtol=5e-2), err

    print("KERNEL_OK")
</pallas_src>

<mosaic_0001>
module attributes {stable_mosaic.version = 11 : i64} {
  func.func @_attention_head_kernel(%arg0: i32, %arg1: memref<8x32xf32, #tpu.memory_space<vmem>>, %arg2: memref<32x48xbf16, #tpu.memory_space<vmem>>, %arg3: memref<1x8x16xf32, #tpu.memory_space<vmem>>) attributes {dimension_semantics = [#tpu.dimension_semantics<parallel>], iteration_bounds = array<i64: 2>, scalar_prefetch = 0 : i64, scratch_operands = 0 : i64, tpu.core_type = #tpu.core_type<tc>, window_params = [{transform_indices = @transform_0, window_bounds = array<i64: 8, 32>}, {pipeline_mode = #tpu.pipeline_mode<synchronous>, transform_indices = @transform_1, window_bounds = array<i64: 32, 48>}, {transform_indices = @transform_2, window_bounds = array<i64: 1, 8, 16>}]} {
    %c0 = arith.constant 0 : index
    %c0_0 = arith.constant 0 : index
    %0 = vector.load %arg1[%c0, %c0_0] : memref<8x32xf32, #tpu.memory_space<vmem>>, vector<8x32xf32>
    %1 = arith.truncf %0 : vector<8x32xf32> to vector<8x32xbf16>
    %c0_1 = arith.constant 0 : index
    %c0_2 = arith.constant 0 : index
    %2 = vector.load %arg2[%c0_1, %c0_2] : memref<32x48xbf16, #tpu.memory_space<vmem>>, vector<32x48xbf16>
    %cst = arith.constant dense<0.000000e+00> : vector<8x48xf32>
    %3 = tpu.matmul %1, %2, %cst {dimension_numbers = #tpu.dot_dimension_numbers<[1], [0], [0], [1], [0, 0, 1, 1], [], []>} : vector<8x32xbf16>, vector<32x48xbf16>, vector<8x48xf32> -> vector<8x48xf32>
    %4 = vector.shape_cast %3 : vector<8x48xf32> to vector<1x8x48xf32>
    %5 = vector.extract_strided_slice %4 {offsets = [0, 0, 0], sizes = [1, 8, 16], strides = [1, 1, 1]} : vector<1x8x48xf32> to vector<1x8x16xf32>
    %cst_3 = arith.constant 0.176776692 : f32
    %6 = vector.broadcast %cst_3 : f32 to vector<1x8x16xf32>
    %7 = arith.mulf %5, %6 : vector<1x8x16xf32>
    %8 = arith.truncf %7 : vector<1x8x16xf32> to vector<1x8x16xbf16>
    %9 = vector.extract_strided_slice %4 {offsets = [0, 0, 16], sizes = [1, 8, 16], strides = [1, 1, 1]} : vector<1x8x48xf32> to vector<1x8x16xf32>
    %10 = arith.truncf %9 : vector<1x8x16xf32> to vector<1x8x16xbf16>
    %11 = vector.extract_strided_slice %4 {offsets = [0, 0, 32], sizes = [1, 8, 16], strides = [1, 1, 1]} : vector<1x8x48xf32> to vector<1x8x16xf32>
    %12 = arith.truncf %11 : vector<1x8x16xf32> to vector<1x8x16xbf16>
    "tpu.trace_start"() <{level = 10 : i32, message = "bqd,bkd->bqk"}> : () -> ()
    %cst_4 = arith.constant dense<0.000000e+00> : vector<1x8x8xf32>
    %13 = tpu.matmul %8, %10, %cst_4 {dimension_numbers = #tpu.dot_dimension_numbers<[2], [2], [1], [1], [0, 0, 0, 1, 1, 1], [0], [0]>} : vector<1x8x16xbf16>, vector<1x8x16xbf16>, vector<1x8x8xf32> -> vector<1x8x8xf32>
    "tpu.trace_stop"() : () -> ()
    %14 = tpu.iota {dimensions = array<i32: 0>} : vector<8x8xi32>
    %15 = tpu.iota {dimensions = array<i32: 1>} : vector<8x8xi32>
    %16 = arith.cmpi sle, %15, %14 : vector<8x8xi32>
    %17 = vector.shape_cast %16 : vector<8x8xi1> to vector<1x8x8xi1>
    %cst_5 = arith.constant 0xFF800000 : f32
    %18 = vector.broadcast %cst_5 : f32 to vector<1x8x8xf32>
    %19 = arith.select %17, %13, %18 : vector<1x8x8xi1>, vector<1x8x8xf32>
    %cst_6 = arith.constant dense<0xFF800000> : vector<1x8xf32>
    %20 = vector.multi_reduction <maximumf>, %19, %cst_6 [2] : vector<1x8x8xf32> to vector<1x8xf32>
    %21 = vector.shape_cast %20 : vector<1x8xf32> to vector<1x8x1xf32>
    %22 = vector.broadcast %21 : vector<1x8x1xf32> to vector<1x8x8xf32>
    %23 = arith.subf %19, %22 : vector<1x8x8xf32>
    %24 = math.exp %23 : vector<1x8x8xf32>
    %cst_7 = arith.constant dense<0.000000e+00> : vector<1x8xf32>
    %25 = vector.multi_reduction <add>, %24, %cst_7 [2] : vector<1x8x8xf32> to vector<1x8xf32>
    %26 = vector.shape_cast %25 : vector<1x8xf32> to vector<1x8x1xf32>
    %27 = tpu.reciprocal %26 {approx = true} : vector<1x8x1xf32> -> vector<1x8x1xf32>
    %28 = vector.broadcast %27 : vector<1x8x1xf32> to vector<1x8x8xf32>
    %29 = arith.mulf %24, %28 : vector<1x8x8xf32>
    %30 = arith.truncf %29 : vector<1x8x8xf32> to vector<1x8x8xbf16>
    "tpu.trace_start"() <{level = 10 : i32, message = "bqk,bkd->bqd"}> : () -> ()
    %cst_8 = arith.constant dense<0.000000e+00> : vector<1x8x16xf32>
    %31 = tpu.matmul %30, %12, %cst_8 {dimension_numbers = #tpu.dot_dimension_numbers<[2], [1], [1], [2], [0, 0, 0, 1, 1, 2], [0], [0]>} : vector<1x8x8xbf16>, vector<1x8x16xbf16>, vector<1x8x16xf32> -> vector<1x8x16xf32>
    "tpu.trace_stop"() : () -> ()
    %c0_9 = arith.constant 0 : index
    %c0_10 = arith.constant 0 : index
    %c0_11 = arith.constant 0 : index
    %32 = vector.load %arg3[%c0_9, %c0_10, %c0_11] : memref<1x8x16xf32, #tpu.memory_space<vmem>>, vector<1x8x16xf32>
    tpu.vector_store %arg3[%c0_9, %c0_10, %c0_11], %31 {strides = array<i32>} : memref<1x8x16xf32, #tpu.memory_space<vmem>>, vector<1x8x16xf32>,
    return
  }
  func.func @transform_0(%arg0: i32) -> (i32, i32) {
    %c0_i32 = arith.constant 0 : i32
    %c0_i32_0 = arith.constant 0 : i32
    return %arg0, %c0_i32 : i32, i32
  }
  func.func @transform_1(%arg0: i32) -> (i32, i32) {
    %c0_i32 = arith.constant 0 : i32
    %c0_i32_0 = arith.constant 0 : i32
    %c0_i32_1 = arith.constant 0 : i32
    return %c0_i32, %c0_i32_0 : i32, i32
  }
  func.func @transform_2(%arg0: i32) -> (i32, i32, i32) {
    %c0_i32 = arith.constant 0 : i32
    %c0_i32_0 = arith.constant 0 : i32
    %c0_i32_1 = arith.constant 0 : i32
    return %arg0, %c0_i32, %c0_i32_0 : i32, i32, i32
  }
}

</mosaic_0001>

<bundles_post_ra>
// kernel: tpu_custom_call.1
= control target key start
LH: loop header
LB: loop body
LE: loop exit
PB: predicated region body
PF: predicated region fallthrough
CT: control target
= control target key end

     0   :  { %7 = vsyncpa [#allocation3], 0  ;;  %s928_s0 = inlined_call_operand.hbm [shape: f32[16,32], index: 0, kind: input, shape index: {}]   ;;  %s929_s1 = inlined_call_operand.hbm [shape: bf16[32,48], index: 1, kind: input, shape index: {}]   ;;  %s930_s2 = inlined_call_operand.hbm [shape: f32[2,8,16], index: 2, kind: output, shape index: {}]  }
   0x1   :  { %9 = vsyncpa [#allocation3 + $0x1], 0 }
   0x2   :  { %10 = vsyncpa [#allocation6], 0 }
   0x3   :  { %11 = vsyncpa [#allocation4], 0 }
   0x4   :  { %13 = vsyncpa [#allocation4 + $0x1], 0  ;;  %s722_s9 = smov 0   ;;  %s724_s10 = smov 0  }
   0x5   :  { %s726_s11 = smov 0   ;;  %s728_s12 = smov 0  }
   0x6 LB: > { %s743_s13 = sadd.s32 4294967295, %s696_s12   ;;  %s453_s14 = sadd.s32 4294967294, %s696_s12   ;;  %s696_s12 = sphi %s728_s12, %s950_s12   ;;  %s692_s11 = sphi %s726_s11, %s949_s11   ;;  %s688_s10 = sphi %s724_s10, %s948_s10   ;;  %s684_s9 = sphi %s722_s9, %s947_s9  }
   0x7   : > { %p39_p0 = scmp.ne.s32.totalorder %s688_s10, %s684_s9  ;;  %p931_p1 = scmp.eq.s32.totalorder %s743_s13, 0 }
   0x8   : > { %p90_p3 = scmp.eq.s32.totalorder %s453_s14, 1  ;;  %p454_p5 = scmp.ge.s32.totalorder %s696_s12, 1 }
   0x9   : > { %p752_p4 = por %p931_p1, %p39_p0  ;;  %p97_p7 = scmp.lt.s32.totalorder %s696_s12, 3 }
   0xa   : > { %p757_p6 = por %p90_p3, %p39_p0  ;;  %s698_s18 = smov [#allocation5]  }
   0xb   : > { %s934_s15 = scalar_select %p752_p4, 1, 0 }
   0xc   : > { %s935_s16 = scalar_select %p757_p6, 1, 0 }
   0xd   : > { %p762_p8 = pnand %p454_p5, %p97_p7  ;;  %s109_s19 = sshll.u32 %s698_s18, 4  ;;  %s766_s19 = int_to_ptr.vmem [resolvable:$true] %s109_s19 }
   0xe   : > { %s778_s21 = sadd.s32 1, %s696_s12   ;;  %s26_s22 = sadd.s32 1, %s692_s11 }
   0xf   : > { %s936_s17 = scalar_select %p762_p8, 1, 0 }
  0x10   : > { %p507_p9 = pneg %p762_p8  ;;  %s23_s23 = ssub.s32 %s696_s12, %s778_s21 }
  0x11   : > { %s568_s26 = scalar_lea.hbm %s929_s1, 256 }
  0x12   : > { %p773_p11 = pnand %p507_p9, %p931_p1  ;;  %p569_p12 = scmp.ne.s32.totalorder %s929_s1, %s568_s26 }
  0x13   : > { %p575_p5 = scmp.lt.u32.totalorder %s568_s26, %s929_s1 }
  0x14   : > { %p570_p13 = pneg %p773_p11 }
  0x16   : > { %p571_p0 = pnand %p570_p13, %p569_p12 }
  0x18   : > { %p572_p3 = pneg %p571_p0 }
  0x1a   : > { %p577_p7 = pnand %p575_p5, %p572_p3 }
  0x1c   : > { %580 = shalt.err (!%p577_p7)
}
  0x1d   : > { %s581_s3 = scalar_lea.vmem %s766_s19, 256  ;;  %p589_p2 = scmp.lt.s32.totalorder %s766_s19, %s766_s19 }
  0x1e   : > { %p582_p9 = scmp.ne.s32.totalorder %s766_s19, %s581_s3  ;;  %p590_p6 = scmp.lt.s32.totalorder %s581_s3, %s581_s3 }
  0x20   : > { %p584_p10 = pnand %p582_p9, %p570_p13  ;;  %p591_p4 = por %p590_p6, %p589_p2 }
  0x22   : > { %p585_p1 = pneg %p584_p10 }
  0x24   : > { %p592_p8 = pnand %p591_p4, %p585_p1 }
  0x26   : > { %595 = shalt.err (!%p592_p8)
}
  0x27   : > { %s699_s4 = smov 64   ;;  %s700_s5 = smov 4  }
  0x28   : > { %510 = dma.hbm_to_vmem [thread:$0]  (!%p773_p11), %s929_s1, 256, %s766_s19, [#allocation6], %s699_s4, %s699_s4, %s700_s5  }
  0x29   : > { %p24_p2 = scmp.eq.s32.totalorder %s23_s23, 0  ;;  %p33_p1 = scmp.ne.s32.totalorder %s692_s11, %s688_s10 }
  0x2a   : > { %p34_p4 = scmp.eq.s32.totalorder %s696_s12, 0  ;;  %p520_p6 = scmp.lt.s32.totalorder %s696_s12, 2 }
  0x2b   : > { %s809_s8 = scalar_select %p24_p2, %s692_s11, %s26_s22  }
  0x2c   : > { %p35_p8 = por %p34_p4, %p33_p1  ;;  %p938_p10 = scmp.eq.s32.totalorder %s743_s13, 1 }
  0x2d   : > { %s123_s18 = sand.u32 1, %s692_s11   ;;  %s458_s24 = sshll.u32 %s696_s12, 7 }
  0x2e   : > { %p813_p12 = por %p938_p10, %p33_p1  ;;  %s457_s25 = sshll.u32 %s123_s18, 3 }
  0x2f   : > { %s822_s27 = scalar_lea.hbm %s928_s0, %s458_s24  ;;  %s127_s19 = scalar_lea.vmem [#allocation2], %s457_s25 }
  0x30   : > { %s134_s22 = sshll.u32 %s127_s19, 4  ;;  %p824_p11 = pnand %p520_p6, %p35_p8  ;;  %s828_s22 = int_to_ptr.vmem [resolvable:$true] %s134_s22 }
  0x31   : > { %s124_s28 = scalar_lea.sflag [#allocation3], %s123_s18  ;;  %s596_s29 = scalar_lea.hbm %s822_s27, 128 }
  0x32   : > { %p597_p13 = scmp.ne.s32.totalorder %s822_s27, %s596_s29  ;;  %p598_p0 = pneg %p824_p11 }
  0x33   : > { %s601_s4 = scalar_lea.hbm %s928_s0, 256  ;;  %p602_p7 = scmp.lt.u32.totalorder %s822_s27, %s928_s0 }
  0x34   : > { %p599_p3 = pnand %p598_p0, %p597_p13  ;;  %p603_p9 = scmp.lt.u32.totalorder %s601_s4, %s596_s29 }
  0x35   : > { %p605_p1 = scmp.lt.u32.totalorder %s596_s29, %s822_s27 }
  0x36   : > { %p600_p5 = pneg %p599_p3  ;;  %p604_p2 = por %p603_p9, %p602_p7 }
  0x38   : > { %p606_p4 = por %p605_p1, %p604_p2 }
  0x3a   : > { %p607_p6 = pnand %p606_p4, %p600_p5 }
  0x3c   : > { %610 = shalt.err (!%p607_p6)
}
  0x3d   : > { %s611_s7 = scalar_lea.vmem %s828_s22, 128  ;;  %s701_s18 = smov [#allocation2]  }
  0x3e   : > { %p612_p8 = scmp.ne.s32.totalorder %s828_s22, %s611_s7  ;;  %s616_s24 = sshll.u32 %s701_s18, 4  ;;  %s617_s24 = int_to_ptr.vmem [resolvable:$false] %s616_s24 }
  0x3f   : > { %s618_s25 = scalar_lea.vmem %s617_s24, 256  ;;  %p619_p3 = scmp.lt.s32.totalorder %s828_s22, %s617_s24 }
  0x40   : > { %p614_p10 = pnand %p612_p8, %p598_p0  ;;  %p620_p7 = scmp.lt.s32.totalorder %s618_s25, %s611_s7 }
  0x42   : > { %p615_p13 = pneg %p614_p10  ;;  %p621_p9 = por %p620_p7, %p619_p3 }
  0x44   : > { %p622_p2 = pnand %p621_p9, %p615_p13 }
  0x46   : > { %625 = shalt.err (!%p622_p2)
}
  0x47   : > { %514 = dma.hbm_to_vmem [thread:$0]  (!%p824_p11), %s822_s27, 128, %s828_s22, %s124_s28  }
  0x48   : > { %p941_p5 = scmp.ne.s32.totalorder %s936_s17, 0 }
  0x49   : > { %s858_s20 = sand.u32 (!%p941_p5), 1, %s688_s10   ;;  %p942_p0 = scmp.ne.s32.totalorder (!%p941_p5), %s934_s15, 0 }
  0x4a   : > { %143 = sbr.rel (%p941_p5) target bundleno = 1188 (0x4a4), region = 28  ;;  %s460_s26 = sshll.u32 (!%p941_p5), %s858_s20, 3 }
  0x4b   : > { %s146_s19 = scalar_lea.sflag (!%p941_p5), [#allocation3], %s858_s20  ;;  %s149_s29 = scalar_lea.vmem (!%p941_p5), [#allocation2], %s460_s26 }
  0x51   : > { %671 = dma.done.wait (%p942_p0), %s146_s19, 128  }
  0x52   : > { %673 = vsyncadd (%p942_p0), %s146_s19, 4294967168  ;;  %p943_p11 = scmp.eq.s32.totalorder %s743_s13, 0 }
  0x54   : > { %675 = dma.done.wait (%p943_p11), [#allocation6], 256   ;;  %p944_p1 = pmov %p943_p11 }
  0x55   : > { %v702_v0 = vmov 0.0   ;;  %vm703_vm0 = vmmov 0   ;;  %v562_v1 = vld [vmem:[#allocation5] sm:$0xff]   ;;  %v563_v2 = vld [vmem:[#allocation5 + $0x8] sm:$0xff]   ;;  %v175_v3 = vld [vmem:[%s149_s29] sm:$0xff]  ;;  %vm193_vm1 = vcmask 261120   ;;  %v290_v14 = vlaneseq }
  0x56   : > { %677 = vsyncadd (%p944_p1), [#allocation6], 4294967040  ;;  %479 = vmatprep.subr.bf16.mxu0 %v702_v0  ;;  %483 = vmatprep.mubr.msk.bf16.mxu0 %vm703_vm0, %v702_v0  ;;  %v176_v4 = vpack.c.bf16 %v175_v3, %v175_v3  ;;  %s704_s15 = smov 112   ;;  %vm243_vm2 = vcmask 130048   ;;  %vm296_vm4 = vcmask 64512   ;;  %s705_s17 = smov 96  }
  0x57   : > { %487 = vmatprep.subr.bf16.mxu1 %v702_v0  ;;  %489 = vmatprep.mubr.msk.bf16.mxu1 %vm703_vm0, %v702_v0  ;;  %v291_v15 = vshrl.u32 %v290_v14, 7  ;;  %v293_v16 = vand.u32 127, %v290_v14  ;;  %vm314_vm5 = vcmask 1043456   ;;  %s469_s27 = sshll.u32 %s743_s13, 7  ;;  %s173_s22 = scalar_lea.vmem [#allocation7], %s460_s26 }
  0x58   : > { %480 = vmatpush3.bf16.msra.mxu0 %v562_v1  ;;  %s373_s23 = sshll.u32 %s173_s22, 4  ;;  %s883_s3 = scalar_lea.hbm %s930_s2, %s469_s27  ;;  %s885_s23 = int_to_ptr.vmem [resolvable:$true] %s373_s23 }
  0x59   : > { %481 = vmatprep.subr.bf16.mxu0 %v702_v0  ;;  %vm294_vm3 = vcmp.le.s32.totalorder %v293_v16, %v291_v15  ;;  %s360_s4 = scalar_lea.sflag [#allocation4], %s858_s20  ;;  %s626_s13 = scalar_lea.vmem %s885_s23, 128 }
  0x5a   : > { %p627_p4 = scmp.ne.s32.totalorder %s885_s23, %s626_s13  ;;  %s706_s5 = smov [#allocation7]  }
  0x5b   : > { %s630_s6 = sshll.u32 %s706_s5, 4  ;;  %s631_s6 = int_to_ptr.vmem [resolvable:$false] %s630_s6 }
  0x5c   : > { %482 = vmatpush3.bf16.msra.mxu0 %v563_v2  ;;  %p628_p6 = pnand %p627_p4, %p813_p12  ;;  %s632_s7 = scalar_lea.vmem %s631_s6, 256 }
  0x5d   : > { %493 = vmatprep.subr.bf16.mxu0 %v702_v0  ;;  %p633_p10 = scmp.lt.s32.totalorder %s885_s23, %s631_s6  ;;  %p634_p13 = scmp.lt.s32.totalorder %s632_s7, %s626_s13 }
  0x5e   : > { %p629_p8 = pneg %p628_p6 }
  0x5f   : > { %484 = vmatmul.mubr.msk.bf16.vlgmr.msra.gmra.mrb[0].mxu0 %vm193_vm1, %v176_v4  ;;  %p635_p3 = por %p634_p13, %p633_p10 }
  0x60   : > { %495 = vmatprep.mubr.msk.bf16.mxu0 %vm703_vm0, %v702_v0 }
  0x61   : > { %p636_p7 = pnand %p635_p3, %p629_p8 }
 0x132   : > { %v231_v5 = vpop.f32.mrb[0].mxu0 }
 0x133   : > { %v485_v6 = vpop.f32.mrb[1].mxu0  ;;  %v239_v7 = vpack.c.bf16 %v231_v5, %v231_v5  ;;  %v237_v12 = vmul.f32 0.17677669, %v231_v5 }
 0x134   : > { %v234_v8 = vpop.f32.mrb[2].mxu0 }
 0x135   : > { %241 = vrot.lane.b32.xlu0 %v239_v7, %s704_s15  ;;  %v486_v9 = vpop.f32.mrb[3].mxu0  ;;  %v238_v13 = vpack.c.bf16 %v237_v12, %v237_v12 }
 0x1a7   : > { %v242_v10 = vpop.permute.xlu0 %241 }
 0x1a8   : > { %v248_v11 = vsel %vm243_vm2, %v242_v10, 0 }
 0x1a9   : > { %488 = vmatpush3.bf16.xpose.msra.mxu1 %v248_v11 }
 0x1b0   : > { %490 = vmatmul.mubr.msk.bf16.vlgmr.msra.gmra.mrb[0].mxu1 %vm243_vm2, %v238_v13 }
 0x283   : > { %v284_v17 = vpop.f32.mrb[0].mxu1 }
 0x284   : > { %v295_v18 = vsel %vm294_vm3, %v284_v17, -inf  ;;  %v491_v19 = vpop.f32.mrb[1].mxu1 }
 0x285   : > { %v287_v20 = vpop.f32.mrb[2].mxu1  ;;  %v297_v21 = vsel %vm296_vm4, %v295_v18, -inf }
 0x286   : > { %298 = vmax.xlane.f32.xlu0 %v297_v21  ;;  %v492_v22 = vpop.f32.mrb[3].mxu1 }
 0x313   : > { %v299_v23 = vpop.xlane.xlu0 %298 }
 0x314   : > { %v300_v24 = vsub.f32 %v295_v18, %v299_v23 }
 0x316   : > { %v301_v25 = vmul.f32 1.442695, %v300_v24 }
 0x318   : > { %564 = vpow2.f32 %v301_v25 }
 0x322   : > { %v565_v26 = vpop.eup %564 }
 0x323   : > { %v303_v27 = vsel %vm296_vm4, %v565_v26, 0.0 }
 0x324   : > { %304 = vadd.xlane.f32.xlu1 %v303_v27 }
 0x335   : > { %309 = vrot.lane.b32.xlu1 %v239_v7, %s705_s17 }
 0x3b1   : > { %v305_v28 = vpop.xlane.xlu1 %304 }
 0x3b2   : > { %566 = vrcp.f32 %v305_v28 }
 0x3b5   : > { %v310_v29 = vpop.permute.xlu1 %309 }
 0x3b6   : > { %v316_v30 = vsel %vm314_vm5, %v310_v29, 0 }
 0x3b7   : > { %494 = vmatpush3.bf16.msra.mxu0 %v316_v30 }
 0x3bc   : > { %v567_v31 = vpop.eup %566 }
 0x3bd   : > { %v307_v32 = vmul.f32 %v567_v31, %v565_v26 }
 0x3bf   : > { %v308_v33 = vpack.c.bf16 %v307_v32, %v307_v32 }
 0x3c1   : > { %496 = vmatmul.mubr.msk.bf16.vlgmr.msra.gmra.mrb[4].mxu0 %vm296_vm4, %v308_v33 }
 0x494   : > { %v352_v34 = vpop.f32.mrb[4].mxu0 }
 0x495   : > { %358 = vst.msk [vmem:[%s173_s22] sm:$0xff] %vm243_vm2, %v352_v34  ;;  %v497_v35 = vpop.f32.mrb[5].mxu0 }
 0x496   : > { %v355_v36 = vpop.f32.mrb[6].mxu0 }
 0x497   : > { %639 = shalt.err (!%p636_p7)
}
 0x498   : > { %s640_s18 = scalar_lea.hbm %s883_s3, 128  ;;  %s644_s20 = scalar_lea.hbm %s930_s2, 256 }
 0x499   : > { %p641_p9 = scmp.ne.s32.totalorder %s883_s3, %s640_s18  ;;  %p645_p0 = scmp.lt.u32.totalorder %s883_s3, %s930_s2 }
 0x49a   : > { %p646_p11 = scmp.lt.u32.totalorder %s644_s20, %s640_s18  ;;  %p648_p4 = scmp.lt.u32.totalorder %s640_s18, %s883_s3 }
 0x49b   : > { %p642_p2 = pnand %p641_p9, %p813_p12 }
 0x49c   : > { %p647_p1 = por %p646_p11, %p645_p0 }
 0x49d   : > { %p643_p5 = pneg %p642_p2 }
 0x49e   : > { %p649_p6 = por %p648_p4, %p647_p1 }
 0x4a0   : > { %p650_p8 = pnand %p649_p6, %p643_p5 }
 0x4a2   : > { %653 = shalt.err (!%p650_p8)
}
 0x4a3   : > { %505 = dma.vmem_to_hbm [thread:$0]  (%p813_p12), %s885_s23, 128, %s883_s3, %s360_s4   ;;  %v498_v37 = vpop.f32.mrb[7].mxu0 }
 0x4a4 PF: > { %s385_s29 = sand.u32 1, %s684_s9   ;;  %p945_p10 = scmp.ne.s32.totalorder %s935_s16, 0 }
 0x4a5   : > { %p946_p13 = scmp.ge.s32.totalorder %s696_s12, 2  ;;  %s386_s15 = scalar_lea.sflag [#allocation4], %s385_s29 }
 0x4a7   : > { %p516_p3 = pnand %p946_p13, %p945_p10 }
 0x4a9   : > { %679 = dma.done.wait (!%p516_p3), %s386_s15, 128  }
 0x4aa   : > { %681 = vsyncadd (!%p516_p3), %s386_s15, 4294967168  ;;  %p16_p7 = scmp.ge.s32.totalorder %s778_s21, 4   ;;  %s947_s9 = smov %s688_s10 }
 0x4ab   : > { %s948_s10 = smov %s692_s11  ;;  %s949_s11 = smov %s809_s8 }
 0x4ac   : > { %s950_s12 = smov %s778_s21  ;;  %18 = sbr.rel (!%p16_p7) target bundleno = 6 (0x6), region = 77 }
 0x4b3   :  { %391 = vsyncpa [#allocation3], 1 }
 0x4b4   :  { %393 = vsyncpa [#allocation3 + $0x1], 1 }
 0x4b5   :  { %394 = vsyncpa [#allocation6], 1 }
 0x4b6   :  { %395 = vsyncpa [#allocation4], 1 }
 0x4b7   :  { %397 = vsyncpa [#allocation4 + $0x1], 1 }

</bundles_post_ra>
